<compile_context>
chip_gen: v7x
topology: tpu7x:2x2x1
jax: 0.10.0
libtpu: 0.0.40
codegen_flags: <defaults>
</compile_context>

<pallas_src>
import jax
import jax.numpy as jnp
from jax.experimental import pallas as pl
from jax.experimental.pallas import tpu as pltpu


def _global_predictor_pool_kernel(x_ref, w1t_ref, shift_ref, out_ref, acc_ref):
    # x_ref:     (bt, Cin, hw_t) f32  -- channels on sublanes, pixels on lanes
    # w1t_ref:   (64, Cin)       bf16 -- conv1x1 weight^T with BN scale folded
    # shift_ref: (64, 1)         f32  -- folded BN shift
    # out_ref:   (1, 64, bt)     f32  -- pooled ReLU sums, written once per
    #                                    batch block at the last HW tile
    # acc_ref:   (64, bt)        f32  -- VMEM scratch accumulator
    t = pl.program_id(1)

    @pl.when(t == 0)
    def _():
        acc_ref[...] = jnp.zeros_like(acc_ref)

    w = w1t_ref[...]          # stationary across the unrolled per-image loop
    shift = shift_ref[...]    # (64, 1) f32
    bt = x_ref.shape[0]
    for i in range(bt):       # static unroll: one image's f32 intermediate live
        xb = x_ref[i].astype(jnp.bfloat16)         # in-kernel f32->bf16 (VPU)
        h = jnp.dot(w, xb, preferred_element_type=jnp.float32)   # (64, hw_t) MXU
        h = jnp.maximum(h + shift, 0.0)                          # BN shift + ReLU
        acc_ref[:, i:i + 1] += jnp.sum(h, axis=1, keepdims=True)  # partial GAP sum

    @pl.when(t == pl.num_programs(1) - 1)
    def _():
        out_ref[...] = acc_ref[...][None]


def _is_dual_tensorcore():
    """True on chips with 2 TensorCores sharing the grid (v7x)."""
    try:
        kind = jax.devices()[0].device_kind.lower()
    except Exception:
        return False
    return "v7" in kind


def _select_tiling(B, Cin, HW, dual_tc):
    """Pick (bt, hw_tile, hw_pad, vmem_limit_bytes) for this generation."""
    if dual_tc:
        # v7x: 64 MiB physical VMEM per TC; keep nb even & >= 2 for both TCs.
        vmem_limit = 48 << 20
        bt = 1
        for cand in (8, 4, 2):
            if B % cand == 0 and (B // cand) >= 2 and (B // cand) % 2 == 0:
                bt = cand
                break
    else:
        # v5e/v6e: single TC, 128 MiB physical VMEM -> biggest bt that divides B.
        vmem_limit = 64 << 20
        bt = next(c for c in (16, 8, 4, 2, 1) if B % c == 0)

    budget = int(0.7 * vmem_limit)

    def fits(hw_t):
        x_bytes = 2 * bt * Cin * hw_t * 4      # double-buffered f32 input block
        h_bytes = 2 * 64 * hw_t * 4            # f32 conv intermediate (headroom x2)
        return x_bytes + h_bytes <= budget

    # 1) whole image per step if it fits (best per-step overhead amortization).
    if fits(HW):
        return bt, HW, 0, vmem_limit

    # 2) largest multiple-of-128 divisor of HW that fits (no padding pass).
    best = 0
    t = 128
    while t <= HW:
        if HW % t == 0 and fits(t):
            best = t
        t += 128
    if best:
        return bt, best, 0, vmem_limit

    # 3) no clean divisor: pad HW once in HBM to a multiple of the largest
    #    fitting tile (extra HBM pass only on this rare path).
    tile = 128
    t = 128
    while t <= HW and fits(t):
        tile = t
        t += 128
    hw_pad = (-HW) % tile
    return bt, tile, hw_pad, vmem_limit


def global_predictor_forward(x_nchw, params, *, bt=None, hw_tile=None):
    """x_nchw: [B, Cin, H, W] float32. Returns dict with 'para': [B, 229]."""
    B, Cin, H, W = x_nchw.shape
    HW = H * W

    dual_tc = _is_dual_tensorcore()
    auto_bt, auto_tile, auto_pad, vmem_limit = _select_tiling(B, Cin, HW, dual_tc)
    if bt is None:
        bt = auto_bt
    if hw_tile is None:
        hw_tile, hw_pad = auto_tile, auto_pad
    else:
        hw_pad = 0 if hw_tile == HW else (-HW) % hw_tile
    assert B % bt == 0, "bt must divide the batch size"
    nb = B // bt

    HW_k = HW + hw_pad
    assert HW_k % hw_tile == 0 and (hw_tile == HW_k or hw_tile % 128 == 0), \
        "hw_tile must divide the (padded) HW and be a multiple of 128 or full"
    n_hw = HW_k // hw_tile

    # NCHW -> [B, Cin, HW]: free reshape; NO dtype cast (kernel casts in VMEM).
    x = x_nchw.reshape(B, Cin, HW)
    if hw_pad:
        # One-off pad pass in HBM; the zero pixels contribute exactly
        # relu(shift) per channel to the pooled sums (subtracted below).
        x = jnp.pad(x, ((0, 0), (0, 0), (0, hw_pad)))

    # Fold inference BatchNorm: y = conv(x) * scale + shift; scale goes into
    # the transposed conv weight (bf16), shift stays f32.
    eps = 1e-5
    inv_std = 1.0 / jnp.sqrt(params["bn_var"] + eps)
    scale = params["bn_gamma"] * inv_std                                   # (64,)
    shift = (params["bn_beta"] - params["bn_mean"] * scale).astype(jnp.float32)
    w1t = (params["conv1_w"].T * scale[:, None]).astype(jnp.bfloat16)      # (64, Cin)
    shift_col = shift.reshape(64, 1)

    pooled_raw = pl.pallas_call(
        _global_predictor_pool_kernel,
        out_shape=jax.ShapeDtypeStruct((nb, 64, bt), jnp.float32),
        grid_spec=pltpu.PrefetchScalarGridSpec(
            num_scalar_prefetch=0,
            grid=(nb, n_hw),
            in_specs=[
                pl.BlockSpec((bt, Cin, hw_tile), lambda b, t: (b, 0, t)),
                pl.BlockSpec((64, Cin), lambda b, t: (0, 0)),
                pl.BlockSpec((64, 1), lambda b, t: (0, 0)),
            ],
            out_specs=pl.BlockSpec((1, 64, bt), lambda b, t: (b, 0, 0)),
            scratch_shapes=[pltpu.VMEM((64, bt), jnp.float32)],
        ),
        compiler_params=pltpu.CompilerParams(
            dimension_semantics=("parallel", "arbitrary"),
            vmem_limit_bytes=int(vmem_limit)),
    )(x, w1t, shift_col)

    # (nb, 64, bt) -> (B, 64); tiny XLA transpose/reshape on the pooled sums.
    pooled = jnp.transpose(pooled_raw, (0, 2, 1)).reshape(B, 64)
    if hw_pad:
        pooled = pooled - hw_pad * jnp.maximum(shift, 0.0)[None, :]

    # Classifier head hoisted out of the kernel: one batched MXU matmul with
    # M = B; the 1/HW of the global-average-pool is folded into the FC weight.
    fc_w = params["fc_w"].astype(jnp.float32) / HW
    para = pooled @ fc_w + params["fc_b"].astype(jnp.float32)

    return {"visualization": {}, "losses": {}, "para": para}


def init_params(key, in_channels=75):
    ks = jax.random.split(key, 4)
    return {
        "conv1_w": jax.random.normal(ks[0], (in_channels, 64), jnp.float32) * 0.05,
        "bn_gamma": jnp.ones((64,), jnp.float32),
        "bn_beta": jnp.zeros((64,), jnp.float32),
        "bn_mean": jax.random.normal(ks[1], (64,), jnp.float32) * 0.1,
        "bn_var": jnp.abs(jax.random.normal(ks[2], (64,), jnp.float32)) + 0.5,
        "fc_w": jax.random.normal(ks[3], (64, 229), jnp.float32) * 0.05,
        "fc_b": jnp.zeros((229,), jnp.float32),
    }


def _reference_forward(x_nchw, params, compute_dtype=jnp.float32):
    """Pure-JAX reference. With compute_dtype=bf16 it mirrors the kernel math."""
    B, Cin, H, W = x_nchw.shape
    HW = H * W
    eps = 1e-5
    inv_std = 1.0 / jnp.sqrt(params["bn_var"] + eps)
    scale = params["bn_gamma"] * inv_std
    shift = params["bn_beta"] - params["bn_mean"] * scale
    x = x_nchw.reshape(B, Cin, HW).astype(compute_dtype)
    w1t = (params["conv1_w"].T * scale[:, None]).astype(compute_dtype)
    h = jnp.einsum("oc,bcp->bop", w1t, x, preferred_element_type=jnp.float32)
    h = jnp.maximum(h + shift[None, :, None], 0.0)
    pooled = jnp.mean(h, axis=2)                                     # (B, 64)
    return pooled @ params["fc_w"] + params["fc_b"]


def _check(para, x, params):
    B = x.shape[0]
    ref_bf16 = _reference_forward(x, params, compute_dtype=jnp.bfloat16)
    ref_f32 = _reference_forward(x, params, compute_dtype=jnp.float32)
    assert para.shape == (B, 229)
    assert jnp.allclose(para, ref_bf16, atol=2e-3, rtol=2e-3), \
        float(jnp.max(jnp.abs(para - ref_bf16)))
    assert jnp.allclose(para, ref_f32, atol=5e-2, rtol=5e-2), \
        float(jnp.max(jnp.abs(para - ref_f32)))


if __name__ == "__main__":
    key = jax.random.PRNGKey(0)
    k_in, k_in2, k_p = jax.random.split(key, 3)

    B, Cin = 4, 75                    # 'iuv' mode: 3 * 25 channels
    params = init_params(k_p, in_channels=Cin)

    # Case 1: HW divisible by the tile -> exercises the HW-tiled accumulation
    # path (grid = (nb, 2 HW tiles), resident scratch accumulator).
    x1 = jax.random.normal(k_in, (B, Cin, 16, 16), jnp.float32)
    out1 = global_predictor_forward(x1, params, hw_tile=128)
    para1 = jax.block_until_ready(out1["para"])
    _check(para1, x1, params)

    # Case 2: HW = 224 not a multiple of 128 -> exercises the pad-once-in-HBM
    # fallback with the exact relu(shift) correction.
    x2 = jax.random.normal(k_in2, (B, Cin, 16, 14), jnp.float32)
    out2 = global_predictor_forward(x2, params, hw_tile=128)
    para2 = jax.block_until_ready(out2["para"])
    _check(para2, x2, params)

    # Case 3: fully automatic tiling (whole image per step).
    out3 = global_predictor_forward(x1, params)
    para3 = jax.block_until_ready(out3["para"])
    _check(para3, x1, params)

    print("KERNEL_OK")
</pallas_src>

<mosaic_0001>
module attributes {stable_mosaic.version = 11 : i64} {
  func.func @_global_predictor_pool_kernel(%arg0: i32, %arg1: i32, %arg2: memref<4x75x128xf32, #tpu.memory_space<vmem>>, %arg3: memref<64x75xbf16, #tpu.memory_space<vmem>>, %arg4: memref<64x1xf32, #tpu.memory_space<vmem>>, %arg5: memref<1x64x4xf32, #tpu.memory_space<vmem>>, %arg6: memref<64x4xf32, #tpu.memory_space<vmem>>) attributes {dimension_semantics = [#tpu.dimension_semantics<parallel>, #tpu.dimension_semantics<arbitrary>], iteration_bounds = array<i64: 1, 2>, scalar_prefetch = 0 : i64, scratch_operands = 1 : i64, tpu.core_type = #tpu.core_type<tc>, window_params = [{transform_indices = @transform_0, window_bounds = array<i64: 4, 75, 128>}, {pipeline_mode = #tpu.pipeline_mode<synchronous>, transform_indices = @transform_1, window_bounds = array<i64: 64, 75>}, {pipeline_mode = #tpu.pipeline_mode<synchronous>, transform_indices = @transform_2, window_bounds = array<i64: 64, 1>}, {transform_indices = @transform_3, window_bounds = array<i64: 1, 64, 4>}]} {
    %c0_i32 = arith.constant 0 : i32
    %0 = arith.cmpi eq, %arg1, %c0_i32 : i32
    %1 = arith.extui %0 : i1 to i32
    %c0_i32_0 = arith.constant 0 : i32
    %2 = arith.cmpi ne, %1, %c0_i32_0 : i32
    scf.if %2 {
      %cst_41 = arith.constant 0.000000e+00 : f32
      %60 = vector.broadcast %cst_41 : f32 to vector<64x4xf32>
      %c0_42 = arith.constant 0 : index
      %c0_43 = arith.constant 0 : index
      %61 = vector.load %arg6[%c0_42, %c0_43] : memref<64x4xf32, #tpu.memory_space<vmem>>, vector<64x4xf32>
      tpu.vector_store %arg6[%c0_42, %c0_43], %60 {strides = array<i32>} : memref<64x4xf32, #tpu.memory_space<vmem>>, vector<64x4xf32>,
    } else {
    }
    %c0 = arith.constant 0 : index
    %c0_1 = arith.constant 0 : index
    %3 = vector.load %arg3[%c0, %c0_1] : memref<64x75xbf16, #tpu.memory_space<vmem>>, vector<64x75xbf16>
    %c0_2 = arith.constant 0 : index
    %c0_3 = arith.constant 0 : index
    %4 = vector.load %arg4[%c0_2, %c0_3] : memref<64x1xf32, #tpu.memory_space<vmem>>, vector<64x1xf32>
    %c0_4 = arith.constant 0 : index
    %c0_5 = arith.constant 0 : index
    %c0_6 = arith.constant 0 : index
    %5 = vector.load %arg2[%c0_4, %c0_5, %c0_6] : memref<4x75x128xf32, #tpu.memory_space<vmem>>, vector<1x75x128xf32>
    %6 = vector.shape_cast %5 : vector<1x75x128xf32> to vector<75x128xf32>
    %7 = arith.truncf %6 : vector<75x128xf32> to vector<75x128xbf16>
    %cst = arith.constant dense<0.000000e+00> : vector<64x128xf32>
    %8 = tpu.matmul %3, %7, %cst {dimension_numbers = #tpu.dot_dimension_numbers<[1], [0], [0], [1], [0, 0, 1, 1], [], []>} : vector<64x75xbf16>, vector<75x128xbf16>, vector<64x128xf32> -> vector<64x128xf32>
    %9 = vector.broadcast %4 : vector<64x1xf32> to vector<64x128xf32>
    %10 = arith.addf %8, %9 : vector<64x128xf32>
    %cst_7 = arith.constant 0.000000e+00 : f32
    %11 = vector.broadcast %cst_7 : f32 to vector<64x128xf32>
    %12 = arith.maximumf %10, %11 : vector<64x128xf32>
    %c0_8 = arith.constant 0 : index
    %c0_9 = arith.constant 0 : index
    %13 = vector.load %arg6[%c0_8, %c0_9] : memref<64x4xf32, #tpu.memory_space<vmem>>, vector<64x1xf32>
    %cst_10 = arith.constant dense<0.000000e+00> : vector<64xf32>
    %14 = vector.multi_reduction <add>, %12, %cst_10 [1] : vector<64x128xf32> to vector<64xf32>
    %15 = vector.shape_cast %14 : vector<64xf32> to vector<64x1xf32>
    %16 = arith.addf %13, %15 : vector<64x1xf32>
    %c0_11 = arith.constant 0 : index
    %c0_12 = arith.constant 0 : index
    %17 = vector.load %arg6[%c0_11, %c0_12] : memref<64x4xf32, #tpu.memory_space<vmem>>, vector<64x1xf32>
    tpu.vector_store %arg6[%c0_11, %c0_12], %16 {strides = array<i32>} : memref<64x4xf32, #tpu.memory_space<vmem>>, vector<64x1xf32>,
    %c1 = arith.constant 1 : index
    %c0_13 = arith.constant 0 : index
    %c0_14 = arith.constant 0 : index
    %18 = vector.load %arg2[%c1, %c0_13, %c0_14] : memref<4x75x128xf32, #tpu.memory_space<vmem>>, vector<1x75x128xf32>
    %19 = vector.shape_cast %18 : vector<1x75x128xf32> to vector<75x128xf32>
    %20 = arith.truncf %19 : vector<75x128xf32> to vector<75x128xbf16>
    %cst_15 = arith.constant dense<0.000000e+00> : vector<64x128xf32>
    %21 = tpu.matmul %3, %20, %cst_15 {dimension_numbers = #tpu.dot_dimension_numbers<[1], [0], [0], [1], [0, 0, 1, 1], [], []>} : vector<64x75xbf16>, vector<75x128xbf16>, vector<64x128xf32> -> vector<64x128xf32>
    %22 = vector.broadcast %4 : vector<64x1xf32> to vector<64x128xf32>
    %23 = arith.addf %21, %22 : vector<64x128xf32>
    %cst_16 = arith.constant 0.000000e+00 : f32
    %24 = vector.broadcast %cst_16 : f32 to vector<64x128xf32>
    %25 = arith.maximumf %23, %24 : vector<64x128xf32>
    %c0_17 = arith.constant 0 : index
    %c1_18 = arith.constant 1 : index
    %26 = vector.load %arg6[%c0_17, %c1_18] : memref<64x4xf32, #tpu.memory_space<vmem>>, vector<64x1xf32>
    %cst_19 = arith.constant dense<0.000000e+00> : vector<64xf32>
    %27 = vector.multi_reduction <add>, %25, %cst_19 [1] : vector<64x128xf32> to vector<64xf32>
    %28 = vector.shape_cast %27 : vector<64xf32> to vector<64x1xf32>
    %29 = arith.addf %26, %28 : vector<64x1xf32>
    %c0_20 = arith.constant 0 : index
    %c1_21 = arith.constant 1 : index
    %30 = vector.load %arg6[%c0_20, %c1_21] : memref<64x4xf32, #tpu.memory_space<vmem>>, vector<64x1xf32>
    tpu.vector_store %arg6[%c0_20, %c1_21], %29 {strides = array<i32>} : memref<64x4xf32, #tpu.memory_space<vmem>>, vector<64x1xf32>,
    %c2 = arith.constant 2 : index
    %c0_22 = arith.constant 0 : index
    %c0_23 = arith.constant 0 : index
    %31 = vector.load %arg2[%c2, %c0_22, %c0_23] : memref<4x75x128xf32, #tpu.memory_space<vmem>>, vector<1x75x128xf32>
    %32 = vector.shape_cast %31 : vector<1x75x128xf32> to vector<75x128xf32>
    %33 = arith.truncf %32 : vector<75x128xf32> to vector<75x128xbf16>
    %cst_24 = arith.constant dense<0.000000e+00> : vector<64x128xf32>
    %34 = tpu.matmul %3, %33, %cst_24 {dimension_numbers = #tpu.dot_dimension_numbers<[1], [0], [0], [1], [0, 0, 1, 1], [], []>} : vector<64x75xbf16>, vector<75x128xbf16>, vector<64x128xf32> -> vector<64x128xf32>
    %35 = vector.broadcast %4 : vector<64x1xf32> to vector<64x128xf32>
    %36 = arith.addf %34, %35 : vector<64x128xf32>
    %cst_25 = arith.constant 0.000000e+00 : f32
    %37 = vector.broadcast %cst_25 : f32 to vector<64x128xf32>
    %38 = arith.maximumf %36, %37 : vector<64x128xf32>
    %c0_26 = arith.constant 0 : index
    %c2_27 = arith.constant 2 : index
    %39 = vector.load %arg6[%c0_26, %c2_27] : memref<64x4xf32, #tpu.memory_space<vmem>>, vector<64x1xf32>
    %cst_28 = arith.constant dense<0.000000e+00> : vector<64xf32>
    %40 = vector.multi_reduction <add>, %38, %cst_28 [1] : vector<64x128xf32> to vector<64xf32>
    %41 = vector.shape_cast %40 : vector<64xf32> to vector<64x1xf32>
    %42 = arith.addf %39, %41 : vector<64x1xf32>
    %c0_29 = arith.constant 0 : index
    %c2_30 = arith.constant 2 : index
    %43 = vector.load %arg6[%c0_29, %c2_30] : memref<64x4xf32, #tpu.memory_space<vmem>>, vector<64x1xf32>
    tpu.vector_store %arg6[%c0_29, %c2_30], %42 {strides = array<i32>} : memref<64x4xf32, #tpu.memory_space<vmem>>, vector<64x1xf32>,
    %c3 = arith.constant 3 : index
    %c0_31 = arith.constant 0 : index
    %c0_32 = arith.constant 0 : index
    %44 = vector.load %arg2[%c3, %c0_31, %c0_32] : memref<4x75x128xf32, #tpu.memory_space<vmem>>, vector<1x75x128xf32>
    %45 = vector.shape_cast %44 : vector<1x75x128xf32> to vector<75x128xf32>
    %46 = arith.truncf %45 : vector<75x128xf32> to vector<75x128xbf16>
    %cst_33 = arith.constant dense<0.000000e+00> : vector<64x128xf32>
    %47 = tpu.matmul %3, %46, %cst_33 {dimension_numbers = #tpu.dot_dimension_numbers<[1], [0], [0], [1], [0, 0, 1, 1], [], []>} : vector<64x75xbf16>, vector<75x128xbf16>, vector<64x128xf32> -> vector<64x128xf32>
    %48 = vector.broadcast %4 : vector<64x1xf32> to vector<64x128xf32>
    %49 = arith.addf %47, %48 : vector<64x128xf32>
    %cst_34 = arith.constant 0.000000e+00 : f32
    %50 = vector.broadcast %cst_34 : f32 to vector<64x128xf32>
    %51 = arith.maximumf %49, %50 : vector<64x128xf32>
    %c0_35 = arith.constant 0 : index
    %c3_36 = arith.constant 3 : index
    %52 = vector.load %arg6[%c0_35, %c3_36] : memref<64x4xf32, #tpu.memory_space<vmem>>, vector<64x1xf32>
    %cst_37 = arith.constant dense<0.000000e+00> : vector<64xf32>
    %53 = vector.multi_reduction <add>, %51, %cst_37 [1] : vector<64x128xf32> to vector<64xf32>
    %54 = vector.shape_cast %53 : vector<64xf32> to vector<64x1xf32>
    %55 = arith.addf %52, %54 : vector<64x1xf32>
    %c0_38 = arith.constant 0 : index
    %c3_39 = arith.constant 3 : index
    %56 = vector.load %arg6[%c0_38, %c3_39] : memref<64x4xf32, #tpu.memory_space<vmem>>, vector<64x1xf32>
    tpu.vector_store %arg6[%c0_38, %c3_39], %55 {strides = array<i32>} : memref<64x4xf32, #tpu.memory_space<vmem>>, vector<64x1xf32>,
    %c1_i32 = arith.constant 1 : i32
    %57 = arith.cmpi eq, %arg1, %c1_i32 : i32
    %58 = arith.extui %57 : i1 to i32
    %c0_i32_40 = arith.constant 0 : i32
    %59 = arith.cmpi ne, %58, %c0_i32_40 : i32
    scf.if %59 {
      %c0_41 = arith.constant 0 : index
      %c0_42 = arith.constant 0 : index
      %60 = vector.load %arg6[%c0_41, %c0_42] : memref<64x4xf32, #tpu.memory_space<vmem>>, vector<64x4xf32>
      %61 = vector.shape_cast %60 : vector<64x4xf32> to vector<1x64x4xf32>
      %c0_43 = arith.constant 0 : index
      %c0_44 = arith.constant 0 : index
      %c0_45 = arith.constant 0 : index
      %62 = vector.load %arg5[%c0_43, %c0_44, %c0_45] : memref<1x64x4xf32, #tpu.memory_space<vmem>>, vector<1x64x4xf32>
      tpu.vector_store %arg5[%c0_43, %c0_44, %c0_45], %61 {strides = array<i32>} : memref<1x64x4xf32, #tpu.memory_space<vmem>>, vector<1x64x4xf32>,
    } else {
    }
    return
  }
  func.func @transform_0(%arg0: i32, %arg1: i32) -> (i32, i32, i32) {
    %c0_i32 = arith.constant 0 : i32
    %c0_i32_0 = arith.constant 0 : i32
    return %arg0, %c0_i32, %arg1 : i32, i32, i32
  }
  func.func @transform_1(%arg0: i32, %arg1: i32) -> (i32, i32) {
    %c0_i32 = arith.constant 0 : i32
    %c0_i32_0 = arith.constant 0 : i32
    %c0_i32_1 = arith.constant 0 : i32
    return %c0_i32, %c0_i32_0 : i32, i32
  }
  func.func @transform_2(%arg0: i32, %arg1: i32) -> (i32, i32) {
    %c0_i32 = arith.constant 0 : i32
    %c0_i32_0 = arith.constant 0 : i32
    %c0_i32_1 = arith.constant 0 : i32
    return %c0_i32, %c0_i32_0 : i32, i32
  }
  func.func @transform_3(%arg0: i32, %arg1: i32) -> (i32, i32, i32) {
    %c0_i32 = arith.constant 0 : i32
    %c0_i32_0 = arith.constant 0 : i32
    %c0_i32_1 = arith.constant 0 : i32
    return %arg0, %c0_i32, %c0_i32_0 : i32, i32, i32
  }
}

</mosaic_0001>

<bundles_post_ra>
// kernel: tpu_custom_call.1
= control target key start
LH: loop header
LB: loop body
LE: loop exit
PB: predicated region body
PF: predicated region fallthrough
CT: control target
= control target key end

     0   :  { %8 = vsyncpa [#allocation4], 0  ;;  %s1843_s0 = inlined_call_operand.hbm [shape: f32[4,75,256], index: 0, kind: input, shape index: {}]   ;;  %s1844_s1 = inlined_call_operand.hbm [shape: bf16[64,75], index: 1, kind: input, shape index: {}]   ;;  %s1845_s2 = inlined_call_operand.hbm [shape: f32[64,1], index: 2, kind: input, shape index: {}]   ;;  %s1846_s3 = inlined_call_operand.hbm [shape: f32[1,64,4], index: 3, kind: output, shape index: {}]  }
   0x1   :  { %10 = vsyncpa [#allocation4 + $0x1], 0 }
   0x2   :  { %11 = vsyncpa [#allocation7], 0 }
   0x3   :  { %12 = vsyncpa [#allocation5], 0  ;;  %s1461_s12 = smov 0   ;;  %s1463_s13 = smov 0  }
   0x4   :  { %s1465_s14 = smov 0   ;;  %s1467_s15 = smov 0  }
   0x5   :  { %s1469_s16 = smov 0   ;;  %s1471_s17 = smov 0  }
   0x6 LB: > { %s981_s18 = sadd.s32 4294967295, %s1425_s17   ;;  %p46_p0 = scmp.ne.s32.totalorder %s1413_s14, %s1409_s13  ;;  %s1425_s17 = sphi %s1471_s17, %s18_s17   ;;  %s1421_s16 = sphi %s1469_s16, %s1867_s16   ;;  %s1417_s15 = sphi %s1467_s15, %s1866_s15   ;;  %s1413_s14 = sphi %s1465_s14, %s1865_s14   ;;  %s1409_s13 = sphi %s1463_s13, %s1864_s13   ;;  %s1405_s12 = sphi %s1461_s12, %s1863_s12  }
   0x7   : > { %p47_p1 = scmp.eq.s32.totalorder %s1425_s17, 0  ;;  %p52_p2 = scmp.ne.s32.totalorder %s1409_s13, %s1405_s12 }
   0x8   : > { %p1496_p3 = scmp.eq.s32.totalorder %s981_s18, 0  ;;  %p982_p4 = scmp.ge.s32.totalorder %s1425_s17, 1 }
   0x9   : > { %p48_p5 = por %p47_p1, %p46_p0  ;;  %p131_p6 = scmp.lt.s32.totalorder %s1425_s17, 3 }
   0xa   : > { %s1852_s19 = scalar_select %p1496_p3, 1, 0 }
   0xb   : > { %p1504_p7 = por %p1496_p3, %p52_p2  ;;  %p1508_p8 = pnand %p982_p4, %p131_p6 }
   0xc   : > { %s1427_s22 = smov [#allocation6]   ;;  %p1183_p11 = scmp.lt.s32.totalorder %s1425_s17, 2 }
   0xd   : > { %s1853_s20 = scalar_select %p1504_p7, 1, 0 }
   0xe   : > { %s1854_s21 = scalar_select %p1508_p8, 1, 0 }
   0xf   : > { %s143_s23 = sshll.u32 %s1427_s22, 4  ;;  %p1170_p9 = pneg %p1508_p8  ;;  %s144_s23 = int_to_ptr.vmem [resolvable:$true] %s143_s23 }
  0x10   : > { %p1521_p12 = pnand %p1183_p11, %p48_p5  ;;  %s1255_s28 = scalar_lea.hbm %s1844_s1, 512 }
  0x11   : > { %p1516_p10 = pnand %p1170_p9, %p1496_p3  ;;  %p1256_p13 = scmp.ne.s32.totalorder %s1844_s1, %s1255_s28 }
  0x12   : > { %s1856_s25 = scalar_select %p1521_p12, 1, 0 }
  0x13   : > { %p1257_p0 = pneg %p1516_p10  ;;  %p1262_p4 = scmp.lt.u32.totalorder %s1255_s28, %s1844_s1 }
  0x15   : > { %p1258_p1 = pnand %p1257_p0, %p1256_p13 }
  0x17   : > { %p1259_p2 = pneg %p1258_p1 }
  0x19   : > { %p1264_p5 = pnand %p1262_p4, %p1259_p2 }
  0x1b   : > { %1267 = shalt.err (!%p1264_p5)
}
  0x1c   : > { %s1268_s6 = scalar_lea.vmem %s144_s23, 512  ;;  %p1276_p3 = scmp.lt.s32.totalorder %s144_s23, %s144_s23 }
  0x1d   : > { %p1269_p6 = scmp.ne.s32.totalorder %s144_s23, %s1268_s6  ;;  %p1277_p7 = scmp.lt.s32.totalorder %s1268_s6, %s1268_s6 }
  0x1f   : > { %p1271_p9 = pnand %p1269_p6, %p1257_p0  ;;  %p1278_p8 = por %p1277_p7, %p1276_p3 }
  0x21   : > { %p1272_p11 = pneg %p1271_p9 }
  0x23   : > { %p1279_p12 = pnand %p1278_p8, %p1272_p11 }
  0x25   : > { %1282 = shalt.err (!%p1279_p12)
}
  0x26   : > { %s1428_s7 = smov 64   ;;  %s1429_s8 = smov 4  }
  0x27   : > { %1173 = dma.hbm_to_vmem [thread:$0]  (!%p1516_p10), %s1844_s1, 512, %s144_s23, [#allocation7], %s1428_s7, %s1428_s7, %s1429_s8  }
  0x28   : > { %s1430_s11 = smov [#allocation8]   ;;  %s1283_s27 = scalar_lea.hbm %s1845_s2, 1024 }
  0x29   : > { %s156_s12 = sshll.u32 %s1430_s11, 4  ;;  %p1284_p3 = scmp.ne.s32.totalorder %s1845_s2, %s1283_s27  ;;  %s157_s12 = int_to_ptr.vmem [resolvable:$true] %s156_s12 }
  0x2a   : > { %p1290_p12 = scmp.lt.u32.totalorder %s1283_s27, %s1845_s2 }
  0x2b   : > { %p1286_p7 = pnand %p1284_p3, %p1257_p0 }
  0x2d   : > { %p1287_p8 = pneg %p1286_p7 }
  0x2f   : > { %p1292_p13 = pnand %p1290_p12, %p1287_p8 }
  0x31   : > { %1295 = shalt.err (!%p1292_p13)
}
  0x32   : > { %s1296_s23 = scalar_lea.vmem %s157_s12, 1024  ;;  %p1304_p5 = scmp.lt.s32.totalorder %s157_s12, %s157_s12 }
  0x33   : > { %p1297_p1 = scmp.ne.s32.totalorder %s157_s12, %s1296_s23  ;;  %p1305_p6 = scmp.lt.s32.totalorder %s1296_s23, %s1296_s23 }
  0x35   : > { %p1299_p2 = pnand %p1297_p1, %p1257_p0  ;;  %p1306_p9 = por %p1305_p6, %p1304_p5 }
  0x37   : > { %p1300_p4 = pneg %p1299_p2 }
  0x39   : > { %p1307_p11 = pnand %p1306_p9, %p1300_p4 }
  0x3b   : > { %1310 = shalt.err (!%p1307_p11)
}
  0x3c   : > { %s1431_s5 = smov 128   ;;  %s1432_s6 = smov 8  }
  0x3d   : > { %1176 = dma.hbm_to_vmem [thread:$0]  (!%p1516_p10), %s1845_s2, 1024, %s157_s12, [#allocation7], %s1431_s5, %s1431_s5, %s1432_s6  }
  0x3e   : > { %s39_s9 = sadd.s32 1, %s1413_s14  ;;  %s170_s10 = sand.u32 1, %s1413_s14  }
  0x3f   : > { %s27_s11 = sadd.s32 1, %s1421_s16  ;;  %s1154_s22 = smul.u32 320, %s170_s10 }
  0x40   : > { %p28_p0 = scmp.ge.s32.totalorder %s27_s11, 2  ;;  %s986_s26 = sshll.u32 %s1421_s16, 7 }
  0x41   : > { %s1579_s24 = scalar_lea.hbm %s1843_s0, %s986_s26  ;;  %s174_s29 = scalar_lea.vmem [#allocation3], %s1154_s22 }
  0x42   : > { %s1869_s11 = smov (%p28_p0, %s27_s11), 0  ;;  %s183_s30 = sshll.u32 %s174_s29, 4  ;;  %s1587_s30 = int_to_ptr.vmem [resolvable:$true] %s183_s30 }
  0x43   : > { %s35_s12 = ssub.s32 %s1421_s16, %s1869_s11  ;;  %s1589_s23 = scalar_lea.sflag [#allocation4], %s170_s10 }
  0x44   : > { %p1583_p10 = scmp.eq.s32.totalorder %s35_s12, 0  ;;  %s1311_s7 = scalar_lea.hbm %s1579_s24, 5120 }
  0x45   : > { %p1312_p3 = scmp.ne.s32.totalorder %s1579_s24, %s1311_s7  ;;  %p1858_p7 = scmp.ne.s32.totalorder %s1856_s25, 0 }
  0x46   : > { %s1316_s22 = scalar_lea.hbm %s1843_s0, 10240  ;;  %p1317_p1 = scmp.lt.u32.totalorder %s1579_s24, %s1843_s0 }
  0x47   : > { %p1313_p8 = pneg %p1858_p7  ;;  %p1318_p2 = scmp.lt.u32.totalorder %s1316_s22, %s1311_s7 }
  0x48   : > { %p1320_p5 = scmp.lt.u32.totalorder %s1311_s7, %s1579_s24 }
  0x49   : > { %p1314_p12 = pnand %p1313_p8, %p1312_p3  ;;  %p1319_p4 = por %p1318_p2, %p1317_p1 }
  0x4b   : > { %p1315_p13 = pneg %p1314_p12  ;;  %p1321_p6 = por %p1320_p5, %p1319_p4 }
  0x4d   : > { %p1322_p9 = pnand %p1321_p6, %p1315_p13 }
  0x4f   : > { %1325 = shalt.err (!%p1322_p9)
}
  0x50   : > { %s1326_s10 = scalar_lea.vmem %s1587_s30, 5120  ;;  %s1433_s12 = smov [#allocation3]  }
  0x51   : > { %p1327_p11 = scmp.ne.s32.totalorder %s1587_s30, %s1326_s10  ;;  %s1331_s29 = sshll.u32 %s1433_s12, 4  ;;  %s1332_s29 = int_to_ptr.vmem [resolvable:$false] %s1331_s29 }
  0x52   : > { %s1333_s8 = scalar_lea.vmem %s1332_s29, 10240  ;;  %p1334_p12 = scmp.lt.s32.totalorder %s1587_s30, %s1332_s29 }
  0x53   : > { %p1329_p0 = pnand %p1327_p11, %p1313_p8  ;;  %p1335_p1 = scmp.lt.s32.totalorder %s1333_s8, %s1326_s10 }
  0x55   : > { %p1330_p3 = pneg %p1329_p0  ;;  %p1336_p2 = por %p1335_p1, %p1334_p12 }
  0x57   : > { %p1337_p4 = pnand %p1336_p2, %p1330_p3 }
  0x59   : > { %1340 = shalt.err (!%p1337_p4)
}
  0x5a   : > { %s1434_s7 = smov 256   ;;  %p1859_p8 = scmp.ne.s32.totalorder %s1854_s21, 0 }
  0x5b   : > { %1180 = dma.hbm_to_vmem [thread:$0]  (!%p1858_p7), %s1579_s24, 5120, %s1587_s30, %s1589_s23, %s1434_s7, %s1431_s5, %s1432_s6  }
  0x5c   : > { %s1624_s26 = scalar_select %p1583_p10, %s1413_s14, %s39_s9  }
  0x5d   : > { %195 = sbr.rel (%p1859_p8) target bundleno = 595 (0x253), region = 32  ;;  %s197_s22 = sand.u32 (!%p1859_p8), 1, %s1409_s13  }
  0x5e   : > { %s1155_s25 = smul.u32 (!%p1859_p8), 320, %s197_s22  ;;  %s198_s27 = scalar_lea.sflag (!%p1859_p8), [#allocation4], %s197_s22 }
  0x5f   : > { %p1860_p13 = scmp.ne.s32.totalorder (!%p1859_p8), %s1853_s20, 0 }
  0x60   : > { %s1629_s28 = scalar_lea.vmem (!%p1859_p8), [#allocation3], %s1155_s25 }
  0x64   : > { %1392 = dma.done.wait (%p1860_p13), %s198_s27, 5120  }
  0x65   : > { %1394 = vsyncadd (%p1860_p13), %s198_s27, 4294962176  ;;  %p1861_p7 = scmp.ne.s32.totalorder %s1852_s19, 0 }
  0x67   : > { %1396 = dma.done.wait (%p1861_p7), [#allocation7], 1536  }
  0x68   : > { %1398 = vsyncadd (%p1861_p7), [#allocation7], 4294965760  ;;  %p990_p10 = scmp.ne.s32.totalorder %s1417_s15, 0 }
  0x69   : > { %vm233_vm0 = vcmask (!%p990_p10), 31744   ;;  %v1435_v0 = vmov (!%p990_p10), 0.0  }
  0x6a   : > { %232 = sbr.rel (%p990_p10) target bundleno = 113 (0x71), region = 48  ;;  %234 = vst.msk [vmem:[#allocation2] sm:$0xff] (!%p990_p10), %vm233_vm0, %v1435_v0  ;;  %235 = vst.msk [vmem:[#allocation2 + $0x8] sm:$0xff] (!%p990_p10), %vm233_vm0, %v1435_v0 }
  0x6b   : > { %236 = vst.msk [vmem:[#allocation2 + $0x10] sm:$0xff] (!%p990_p10), %vm233_vm0, %v1435_v0  ;;  %237 = vst.msk [vmem:[#allocation2 + $0x18] sm:$0xff] (!%p990_p10), %vm233_vm0, %v1435_v0 }
  0x6c   : > { %238 = vst.msk [vmem:[#allocation2 + $0x20] sm:$0xff] (!%p990_p10), %vm233_vm0, %v1435_v0  ;;  %239 = vst.msk [vmem:[#allocation2 + $0x28] sm:$0xff] (!%p990_p10), %vm233_vm0, %v1435_v0 }
  0x6d   : > { %240 = vst.msk [vmem:[#allocation2 + $0x30] sm:$0xff] (!%p990_p10), %vm233_vm0, %v1435_v0  ;;  %241 = vst.msk [vmem:[#allocation2 + $0x38] sm:$0xff] (!%p990_p10), %vm233_vm0, %v1435_v0 }
  0x71 PF: > { %v258_v1 = vld [vmem:[%s1629_s28] sm:$0xff]  ;;  %v259_v2 = vld [vmem:[%s1629_s28 + $0x8] sm:$0xff]  ;;  %v999_v3 = vld [vmem:[%s1629_s28 + $0x50] sm:$0xff]  ;;  %v1436_v13 = vmov 0   ;;  %vm346_vm1 = vcmask 1044480   ;;  %vm347_vm2 = vcmask 1045504  }
  0x72   : > { %v268_v4 = vpack.c.bf16 %v259_v2, %v258_v1  ;;  %v1000_v5 = vld [vmem:[%s1629_s28 + $0x58] sm:$0xff]  ;;  %v260_v6 = vld [vmem:[%s1629_s28 + $0x10] sm:$0xff]  ;;  %v1001_v10 = vld [vmem:[%s1629_s28 + $0x60] sm:$0xff]  ;;  %1250 = vset.pattern.permute.xlu1 %v1436_v13  ;;  %1249 = vset.pattern.permute.xlu0 %v1436_v13  ;;  %v1437_v26 = vmov 65535   ;;  %vm333_vm3 = vcmask 613376   ;;  %vm458_vm4 = vcmask 7168  }
  0x73   : > { %v261_v7 = vld [vmem:[%s1629_s28 + $0x18] sm:$0xff]  ;;  %v478_v8 = vpack.c.bf16 %v1000_v5, %v999_v3  ;;  %v1002_v11 = vld [vmem:[%s1629_s28 + $0x68] sm:$0xff]  ;;  %v262_v12 = vld [vmem:[%s1629_s28 + $0x20] sm:$0xff]  ;;  %v348_v27 = vsel %vm346_vm1, 4294967295, %v1437_v26  ;;  %vm591_vm5 = vcmask 15368   ;;  %vm724_vm6 = vcmask 23568  }
  0x74   : > { %v269_v9 = vpack.c.bf16 %v261_v7, %v260_v6  ;;  %1082 = vmatprep.subr.bf16.mxu0 %v268_v4  ;;  %v479_v14 = vpack.c.bf16 %v1002_v11, %v1001_v10  ;;  %v263_v15 = vld [vmem:[%s1629_s28 + $0x28] sm:$0xff]  ;;  %v1003_v16 = vld [vmem:[%s1629_s28 + $0x70] sm:$0xff]  ;;  %v1004_v17 = vld [vmem:[%s1629_s28 + $0x78] sm:$0xff]  ;;  %v1664_v34 = vsel %vm347_vm2, %v348_v27, 0  ;;  %vm857_vm7 = vcmask 31768   ;;  %p1041_p5 = scmp.ne.s32.totalorder %s1417_s15, 1 }
  0x75   : > { %1100 = vmatprep.subr.bf16.mxu1 %v478_v8  ;;  %1083 = vmatpush3.bf16.msra.mxu0 %v268_v4  ;;  %v264_v18 = vld [vmem:[%s1629_s28 + $0x30] sm:$0xff]  ;;  %v265_v19 = vld [vmem:[%s1629_s28 + $0x38] sm:$0xff]  ;;  %v270_v20 = vpack.c.bf16 %v263_v15, %v262_v12  ;;  %v1005_v21 = vld [vmem:[%s1629_s28 + $0x80] sm:$0xff]  ;;  %v480_v25 = vpack.c.bf16 %v1004_v17, %v1003_v16  ;;  %vm878_vm8 = vcmask (!%p1041_p5), 31744  }
  0x76   : > { %1101 = vmatpush3.bf16.msra.mxu1 %v478_v8  ;;  %1084 = vmatprep.subr.bf16.mxu0 %v269_v9  ;;  %v1006_v22 = vld [vmem:[%s1629_s28 + $0x88] sm:$0xff]  ;;  %v266_v23 = vld [vmem:[%s1629_s28 + $0x40] sm:$0xff]  ;;  %v1007_v28 = vld [vmem:[%s1629_s28 + $0x90] sm:$0xff]  ;;  %v271_v31 = vpack.c.bf16 %v265_v19, %v264_v18 }
  0x77   : > { %v267_v24 = vld [vmem:[%s1629_s28 + $0x48] sm:$0x7]  ;;  %1102 = vmatprep.subr.bf16.mxu1 %v479_v14  ;;  %v1008_v29 = vld [vmem:[%s1629_s28 + $0x98] sm:$0x7]  ;;  %v1661_v30 = vld [vmem:[#allocation6] sm:$0xff]   ;;  %v481_v33 = vpack.c.bf16 %v1006_v22, %v1005_v21 }
  0x78   : > { %v272_v32 = vpack.c.bf16 %v267_v24, %v266_v23  ;;  %v482_v35 = vpack.c.bf16 %v1008_v29, %v1007_v28  ;;  %1092 = vmatprep.mubr.msk.bf16.mxu0 %vm333_vm3, %v1661_v30  ;;  %1110 = vmatprep.mubr.msk.bf16.mxu1 %vm333_vm3, %v1661_v30  ;;  %v1013_v38 = vld [vmem:[%s1629_s28 + $0xa0] sm:$0xff]  ;;  %v1014_v39 = vld [vmem:[%s1629_s28 + $0xa8] sm:$0xff]  ;;  %v1027_v40 = vld [vmem:[%s1629_s28 + $0xf0] sm:$0xff] }
  0x79   : > { %1085 = vmatpush3.bf16.msra.mxu0 %v269_v9  ;;  %v1028_v41 = vld [vmem:[%s1629_s28 + $0xf8] sm:$0xff]  ;;  %v1676_v42 = vld [vmem:[#allocation6 + $0x8] sm:$0xff]   ;;  %v611_v43 = vpack.c.bf16 %v1014_v39, %v1013_v38  ;;  %v252_v44 = vld [vmem:[#allocation8 + $0x10] sm:$0xff] }
  0x7a   : > { %1103 = vmatpush3.bf16.msra.mxu1 %v479_v14  ;;  %1086 = vmatprep.subr.bf16.mxu0 %v270_v20  ;;  %v351_v36 = vand.u32 %v1664_v34, %v272_v32  ;;  %v484_v37 = vand.u32 %v482_v35, %v1664_v34  ;;  %v744_v45 = vpack.c.bf16 %v1028_v41, %v1027_v40  ;;  %v1015_v46 = vld [vmem:[%s1629_s28 + $0xb0] sm:$0xff]  ;;  %v1016_v47 = vld [vmem:[%s1629_s28 + $0xb8] sm:$0xff]  ;;  %v250_v48 = vld [vmem:[#allocation8] sm:$0xff] }
  0x7b   : > { %1104 = vmatprep.subr.bf16.mxu1 %v480_v25  ;;  %285 = vperm.xlu1 %1250, %v252_v44   ;;  %v1029_v49 = vld [vmem:[%s1629_s28 + $0x100] sm:$0xff]  ;;  %v1030_v50 = vld [vmem:[%s1629_s28 + $0x108] sm:$0xff]  ;;  %v253_v51 = vld [vmem:[#allocation8 + $0x18] sm:$0xff]  ;;  %v612_v53 = vpack.c.bf16 %v1016_v47, %v1015_v46 }
  0x7c   : > { %275 = vperm.xlu0 %1249, %v250_v48   ;;  %v251_v52 = vld [vmem:[#allocation8 + $0x8] sm:$0xff]  ;;  %v745_v54 = vpack.c.bf16 %v1030_v50, %v1029_v49  ;;  %v1253_v55 = vld [vmem:[#allocation6 + $0x10] sm:$0xff]   ;;  %v1017_v56 = vld [vmem:[%s1629_s28 + $0xc0] sm:$0xff] }
  0x7d   : > { %1087 = vmatpush3.bf16.msra.mxu0 %v270_v20  ;;  %v1018_v57 = vld [vmem:[%s1629_s28 + $0xc8] sm:$0xff]  ;;  %v1031_v58 = vld [vmem:[%s1629_s28 + $0x110] sm:$0xff]  ;;  %v1032_v59 = vld [vmem:[%s1629_s28 + $0x118] sm:$0xff] }
  0x7e   : > { %1105 = vmatpush3.bf16.msra.mxu1 %v480_v25  ;;  %1088 = vmatprep.subr.bf16.mxu0 %v271_v31  ;;  %v255_v60 = vld [vmem:[#allocation8 + $0x28] sm:$0xff]  ;;  %v1254_v61 = vld [vmem:[#allocation6 + $0x18] sm:$0xff]   ;;  %v613_v62 = vpack.c.bf16 %v1018_v57, %v1017_v56  ;;  %v1019_v63 = vld [vmem:[%s1629_s28 + $0xd0] sm:$0xff]  ;;  %v746_v2 = vpack.c.bf16 %v1032_v59, %v1031_v58 }
  0x7f   : > { %1106 = vmatprep.subr.bf16.mxu1 %v481_v33  ;;  %290 = vperm.xlu1 %1250, %v253_v51   ;;  %v1020_v0 = vld [vmem:[%s1629_s28 + $0xd8] sm:$0xff]  ;;  %v254_v1 = vld [vmem:[#allocation8 + $0x20] sm:$0xff]  ;;  %v1022_v5 = vld [vmem:[%s1629_s28 + $0xe8] sm:$0x7] }
  0x80   : > { %280 = vperm.xlu0 %1249, %v251_v52   ;;  %v1033_v3 = vld [vmem:[%s1629_s28 + $0x120] sm:$0xff]  ;;  %v1034_v6 = vld [vmem:[%s1629_s28 + $0x128] sm:$0xff]  ;;  %v1035_v7 = vld [vmem:[%s1629_s28 + $0x130] sm:$0xff]  ;;  %v614_v10 = vpack.c.bf16 %v1020_v0, %v1019_v63 }
  0x81   : > { %1089 = vmatpush3.bf16.msra.mxu0 %v271_v31  ;;  %v1021_v4 = vld [vmem:[%s1629_s28 + $0xe0] sm:$0xff]  ;;  %v1036_v8 = vld [vmem:[%s1629_s28 + $0x138] sm:$0x7]  ;;  %v747_v12 = vpack.c.bf16 %v1034_v6, %v1033_v3  ;;  %v256_v14 = vld [vmem:[#allocation8 + $0x30] sm:$0xff] }
  0x82   : > { %1107 = vmatpush3.bf16.msra.mxu1 %v481_v33  ;;  %1090 = vmatprep.subr.bf16.mxu0 %v351_v36  ;;  %v257_v9 = vld [vmem:[#allocation8 + $0x38] sm:$0xff]  ;;  %v615_v11 = vpack.c.bf16 %v1022_v5, %v1021_v4  ;;  %v748_v13 = vpack.c.bf16 %v1036_v8, %v1035_v7 }
  0x83   : > { %1108 = vmatprep.subr.bf16.mxu1 %v484_v37  ;;  %300 = vperm.xlu1 %1250, %v255_v60  }
  0x84   : > { %295 = vperm.xlu0 %1249, %v254_v1   ;;  %v617_v15 = vand.u32 %v615_v11, %v1664_v34  ;;  %v750_v16 = vand.u32 %v748_v13, %v1664_v34 }
  0x85   : > { %1091 = vmatpush3.bf16.msra.mxu0 %v351_v36 }
  0x86   : > { %1109 = vmatpush3.bf16.msra.mxu1 %v484_v37  ;;  %1118 = vmatprep.subr.bf16.mxu0 %v611_v43 }
  0x87   : > { %1136 = vmatprep.subr.bf16.mxu1 %v744_v45  ;;  %310 = vperm.xlu1 %1250, %v257_v9  }
  0x88   : > { %1093 = vmatmul.mubr.msk.bf16.vlgmr.msra.gmra.mrb[0].mxu0 %vm333_vm3, %v1676_v42  ;;  %305 = vperm.xlu0 %1249, %v256_v14  }
  0x89   : > { %1111 = vmatmul.mubr.msk.bf16.vlgmr.msra.gmra.mrb[0].mxu1 %vm333_vm3, %v1676_v42  ;;  %1119 = vmatpush3.bf16.msra.mxu0 %v611_v43 }
  0x8a   : > { %1137 = vmatpush3.bf16.msra.mxu1 %v744_v45  ;;  %1120 = vmatprep.subr.bf16.mxu0 %v612_v53 }
  0x8b   : > { %1138 = vmatprep.subr.bf16.mxu1 %v745_v54  ;;  %1096 = vmatprep.mubr.msk.bf16.mxu0 %vm333_vm3, %v1253_v55 }
  0x8c   : > { %1114 = vmatprep.mubr.msk.bf16.mxu1 %vm333_vm3, %v1253_v55 }
  0x8d   : > { %1121 = vmatpush3.bf16.msra.mxu0 %v612_v53 }
  0x8e   : > { %1139 = vmatpush3.bf16.msra.mxu1 %v745_v54  ;;  %1122 = vmatprep.subr.bf16.mxu0 %v613_v62 }
  0x8f   : > { %1140 = vmatprep.subr.bf16.mxu1 %v746_v2 }
  0x90   : > { %1097 = vmatmul.mubr.msk.bf16.gmra.mrb[4].mxu0 %vm333_vm3, %v1254_v61 }
  0x91   : > { %1115 = vmatmul.mubr.msk.bf16.gmra.mrb[4].mxu1 %vm333_vm3, %v1254_v61  ;;  %1123 = vmatpush3.bf16.msra.mxu0 %v613_v62 }
  0x92   : > { %1141 = vmatpush3.bf16.msra.mxu1 %v746_v2  ;;  %1124 = vmatprep.subr.bf16.mxu0 %v614_v10 }
  0x93   : > { %1142 = vmatprep.subr.bf16.mxu1 %v747_v12  ;;  %1128 = vmatprep.mubr.msk.bf16.mxu0 %vm333_vm3, %v1661_v30 }
  0x94   : > { %1146 = vmatprep.mubr.msk.bf16.mxu1 %vm333_vm3, %v1661_v30 }
  0x95   : > { %1125 = vmatpush3.bf16.msra.mxu0 %v614_v10 }
  0x96   : > { %1143 = vmatpush3.bf16.msra.mxu1 %v747_v12  ;;  %1126 = vmatprep.subr.bf16.mxu0 %v617_v15 }
  0x97   : > { %1144 = vmatprep.subr.bf16.mxu1 %v750_v16 }
  0x99   : > { %1127 = vmatpush3.bf16.msra.mxu0 %v617_v15 }
  0x9a   : > { %1145 = vmatpush3.bf16.msra.mxu1 %v750_v16 }
  0x9c   : > { %1129 = vmatmul.mubr.msk.bf16.vlgmr.msra.gmra.mrb[8].mxu0 %vm333_vm3, %v1676_v42 }
  0x9d   : > { %1147 = vmatmul.mubr.msk.bf16.vlgmr.msra.gmra.mrb[8].mxu1 %vm333_vm3, %v1676_v42  ;;  %1132 = vmatprep.mubr.msk.bf16.mxu0 %vm333_vm3, %v1253_v55 }
  0x9e   : > { %1150 = vmatprep.mubr.msk.bf16.mxu1 %vm333_vm3, %v1253_v55 }
  0xa4   : > { %1133 = vmatmul.mubr.msk.bf16.gmra.mrb[12].mxu0 %vm333_vm3, %v1254_v61 }
  0xa5   : > { %1151 = vmatmul.mubr.msk.bf16.gmra.mrb[12].mxu1 %vm333_vm3, %v1254_v61 }
  0xfa   : > { %v1720_v19 = vpop.permute.xlu1 %285 }
  0xfb   : > { %v1716_v17 = vpop.permute.xlu0 %275 }
  0xfe   : > { %v1728_v35 = vpop.permute.xlu1 %290 }
  0xff   : > { %v1718_v18 = vpop.permute.xlu0 %280 }
 0x102   : > { %v1735_v50 = vpop.permute.xlu1 %300 }
 0x103   : > { %v1722_v20 = vpop.permute.xlu0 %295 }
 0x106   : > { %v1740_v58 = vpop.permute.xlu1 %310 }
 0x107   : > { %v1732_v40 = vpop.permute.xlu0 %305 }
 0x15b   : > { %v1094_v21 = vpop.f32.mrb[0].mxu0 }
 0x15c   : > { %v396_v22 = vadd.f32 %v1094_v21, %v1720_v19  ;;  %v1112_v23 = vpop.f32.mrb[0].mxu1  ;;  %v387_v24 = vpop.f32.mrb[1].mxu0 }
 0x15d   : > { %v529_v25 = vadd.f32 %v1112_v23, %v1720_v19  ;;  %v520_v26 = vpop.f32.mrb[1].mxu1  ;;  %v1095_v27 = vpop.f32.mrb[2].mxu0  ;;  %v388_v29 = vadd.f32 %v387_v24, %v1716_v17 }
 0x15e   : > { %v420_v28 = vmax.f32 %v396_v22, 0.0  ;;  %v521_v30 = vadd.f32 %v520_v26, %v1716_v17  ;;  %v1113_v31 = vpop.f32.mrb[2].mxu1  ;;  %v390_v32 = vpop.f32.mrb[3].mxu0  ;;  %v399_v38 = vadd.f32 %v1095_v27, %v1728_v35 }
 0x15f   : > { %v553_v33 = vmax.f32 %v529_v25, 0.0  ;;  %v523_v34 = vpop.f32.mrb[3].mxu1  ;;  %v418_v37 = vmax.f32 %v388_v29, 0.0  ;;  %v391_v39 = vadd.f32 %v390_v32, %v1718_v18  ;;  %v532_v47 = vadd.f32 %v1113_v31, %v1728_v35 }
 0x160   : > { %438 = vadd.xlane.f32.xlu0 %v420_v28  ;;  %v551_v36 = vmax.f32 %v521_v30, 0.0  ;;  %v421_v46 = vmax.f32 %v399_v38, 0.0  ;;  %v524_v55 = vadd.f32 %v523_v34, %v1718_v18 }
 0x161   : > { %571 = vadd.xlane.f32.xlu1 %v553_v33  ;;  %v419_v51 = vmax.f32 %v391_v39, 0.0  ;;  %v554_v54 = vmax.f32 %v532_v47, 0.0 }
 0x162   : > { %v552_v59 = vmax.f32 %v524_v55, 0.0 }
 0x163   : > { %v1098_v41 = vpop.f32.mrb[4].mxu0 }
 0x164   : > { %v1116_v42 = vpop.f32.mrb[4].mxu1  ;;  %v403_v43 = vpop.f32.mrb[5].mxu0  ;;  %434 = vadd.xlane.f32.xlu0 %v418_v37  ;;  %v412_v52 = vadd.f32 %v1098_v41, %v1732_v40 }
 0x165   : > { %v536_v44 = vpop.f32.mrb[5].mxu1  ;;  %567 = vadd.xlane.f32.xlu1 %v551_v36  ;;  %v1099_v45 = vpop.f32.mrb[6].mxu0  ;;  %v545_v57 = vadd.f32 %v1116_v42, %v1732_v40  ;;  %v404_v62 = vadd.f32 %v403_v43, %v1722_v20 }
 0x166   : > { %v1117_v48 = vpop.f32.mrb[6].mxu1  ;;  %v406_v49 = vpop.f32.mrb[7].mxu0  ;;  %v424_v56 = vmax.f32 %v412_v52, 0.0  ;;  %v415_v60 = vadd.f32 %v1099_v45, %v1740_v58  ;;  %v537_v8 = vadd.f32 %v536_v44, %v1722_v20 }
 0x167   : > { %v539_v53 = vpop.f32.mrb[7].mxu1  ;;  %v557_v61 = vmax.f32 %v545_v57, 0.0  ;;  %v548_v5 = vadd.f32 %v1117_v48, %v1740_v58  ;;  %v422_v9 = vmax.f32 %v404_v62, 0.0  ;;  %v407_v12 = vadd.f32 %v406_v49, %v1735_v50 }
 0x168   : > { %440 = vadd.xlane.f32.xlu0 %v421_v46  ;;  %v425_v4 = vmax.f32 %v415_v60, 0.0  ;;  %v555_v13 = vmax.f32 %v537_v8, 0.0  ;;  %v540_v25 = vadd.f32 %v539_v53, %v1735_v50 }
 0x169   : > { %436 = vadd.xlane.f32.xlu1 %v419_v51  ;;  %v558_v11 = vmax.f32 %v548_v5, 0.0  ;;  %v423_v24 = vmax.f32 %v407_v12, 0.0 }
 0x16a   : > { %v556_v31 = vmax.f32 %v540_v25, 0.0  ;;  %v430_v25 = vld [vmem:[#allocation2 + $0x20] sm:$0xff] }
 0x16c   : > { %573 = vadd.xlane.f32.xlu0 %v554_v54 }
 0x16d   : > { %446 = vadd.xlane.f32.xlu1 %v424_v56 }
 0x16f   : > { %v1130_v63 = vpop.f32.mrb[8].mxu0 }
 0x170   : > { %v1148_v0 = vpop.f32.mrb[8].mxu1  ;;  %v653_v1 = vpop.f32.mrb[9].mxu0  ;;  %569 = vadd.xlane.f32.xlu0 %v552_v59  ;;  %v662_v14 = vadd.f32 %v1130_v63, %v1720_v19  ;;  %v426_v63 = vld [vmem:[#allocation2] sm:$0xff] }
 0x171   : > { %v786_v2 = vpop.f32.mrb[9].mxu1  ;;  %579 = vadd.xlane.f32.xlu1 %v557_v61  ;;  %v1131_v3 = vpop.f32.mrb[10].mxu0  ;;  %v654_v29 = vadd.f32 %v653_v1, %v1716_v17  ;;  %v795_v46 = vadd.f32 %v1148_v0, %v1720_v19  ;;  %v428_v61 = vld [vmem:[#allocation2 + $0x10] sm:$0xff] }
 0x172   : > { %v1149_v6 = vpop.f32.mrb[10].mxu1  ;;  %v656_v7 = vpop.f32.mrb[11].mxu0  ;;  %v686_v28 = vmax.f32 %v662_v14, 0.0  ;;  %v665_v32 = vadd.f32 %v1131_v3, %v1728_v35  ;;  %v787_v34 = vadd.f32 %v786_v2, %v1716_v17  ;;  %v429_v2 = vld [vmem:[#allocation2 + $0x18] sm:$0xff]  ;;  %v427_v3 = vld [vmem:[#allocation2 + $0x8] sm:$0xff] }
 0x173   : > { %v789_v10 = vpop.f32.mrb[11].mxu1  ;;  %v684_v33 = vmax.f32 %v654_v29, 0.0  ;;  %v657_v37 = vadd.f32 %v656_v7, %v1718_v18  ;;  %v819_v51 = vmax.f32 %v795_v46, 0.0 }
 0x174   : > { %448 = vadd.xlane.f32.xlu0 %v425_v4  ;;  %v687_v36 = vmax.f32 %v665_v32, 0.0  ;;  %v817_v38 = vmax.f32 %v787_v34, 0.0  ;;  %v790_v42 = vadd.f32 %v789_v10, %v1718_v18  ;;  %v798_v18 = vadd.f32 %v1149_v6, %v1728_v35 }
 0x175   : > { %442 = vadd.xlane.f32.xlu1 %v422_v9  ;;  %v685_v41 = vmax.f32 %v657_v37, 0.0  ;;  %v432_v9 = vld [vmem:[#allocation2 + $0x30] sm:$0xff] }
 0x176   : > { %v818_v45 = vmax.f32 %v790_v42, 0.0  ;;  %v820_v19 = vmax.f32 %v798_v18, 0.0 }
 0x177   : > { %v1134_v15 = vpop.f32.mrb[12].mxu0 }
 0x178   : > { %v1152_v16 = vpop.f32.mrb[12].mxu1  ;;  %v669_v21 = vpop.f32.mrb[13].mxu0  ;;  %581 = vadd.xlane.f32.xlu0 %v558_v11  ;;  %v678_v39 = vadd.f32 %v1134_v15, %v1732_v40 }
 0x179   : > { %v802_v22 = vpop.f32.mrb[13].mxu1  ;;  %575 = vadd.xlane.f32.xlu1 %v555_v13  ;;  %v1135_v23 = vpop.f32.mrb[14].mxu0  ;;  %v670_v44 = vadd.f32 %v669_v21, %v1722_v20  ;;  %v811_v54 = vadd.f32 %v1152_v16, %v1732_v40 }
 0x17a   : > { %v1153_v26 = vpop.f32.mrb[14].mxu1  ;;  %v672_v27 = vpop.f32.mrb[15].mxu0  ;;  %v690_v43 = vmax.f32 %v678_v39, 0.0  ;;  %v681_v17 = vadd.f32 %v1135_v23, %v1740_v58  ;;  %v803_v52 = vadd.f32 %v802_v22, %v1722_v20  ;;  %v433_v22 = vld [vmem:[#allocation2 + $0x38] sm:$0xff] }
 0x17b   : > { %v805_v30 = vpop.f32.mrb[15].mxu1  ;;  %v688_v47 = vmax.f32 %v670_v44, 0.0  ;;  %v673_v49 = vadd.f32 %v672_v27, %v1735_v50  ;;  %v823_v57 = vmax.f32 %v811_v54, 0.0  ;;  %v814_v59 = vadd.f32 %v1153_v26, %v1740_v58 }
 0x17c   : > { %444 = vadd.xlane.f32.xlu0 %v423_v24  ;;  %v691_v48 = vmax.f32 %v681_v17, 0.0  ;;  %v821_v55 = vmax.f32 %v803_v52, 0.0  ;;  %v806_v56 = vadd.f32 %v805_v30, %v1735_v50 }
 0x17d   : > { %704 = vadd.xlane.f32.xlu1 %v686_v28  ;;  %v689_v53 = vmax.f32 %v673_v49, 0.0  ;;  %v824_v20 = vmax.f32 %v814_v59, 0.0 }
 0x17e   : > { %v822_v60 = vmax.f32 %v806_v56, 0.0 }
 0x180   : > { %577 = vadd.xlane.f32.xlu0 %v556_v31 }
 0x181   : > { %700 = vadd.xlane.f32.xlu1 %v684_v33 }
 0x184   : > { %706 = vadd.xlane.f32.xlu0 %v687_v36  ;;  %v431_v36 = vld [vmem:[#allocation2 + $0x28] sm:$0xff] }
 0x185   : > { %833 = vadd.xlane.f32.xlu1 %v817_v38 }
 0x188   : > { %702 = vadd.xlane.f32.xlu0 %v685_v41 }
 0x189   : > { %712 = vadd.xlane.f32.xlu1 %v690_v43 }
 0x18c   : > { %835 = vadd.xlane.f32.xlu0 %v818_v45 }
 0x18d   : > { %708 = vadd.xlane.f32.xlu1 %v688_v47 }
 0x190   : > { %714 = vadd.xlane.f32.xlu0 %v691_v48 }
 0x191   : > { %837 = vadd.xlane.f32.xlu1 %v819_v51 }
 0x194   : > { %710 = vadd.xlane.f32.xlu0 %v689_v53 }
 0x195   : > { %841 = vadd.xlane.f32.xlu1 %v821_v55 }
 0x198   : > { %839 = vadd.xlane.f32.xlu0 %v820_v19 }
 0x199   : > { %845 = vadd.xlane.f32.xlu1 %v823_v57 }
 0x19c   : > { %843 = vadd.xlane.f32.xlu0 %v822_v60 }
 0x1a0   : > { %847 = vadd.xlane.f32.xlu0 %v824_v20 }
 0x1ed   : > { %v439_v35 = vpop.xlane.xlu0 %438 }
 0x1ee   : > { %v572_v62 = vpop.xlane.xlu1 %571  ;;  %v452_v40 = vadd.f32 %v439_v35, %v428_v61 }
 0x1f0   : > { %461 = vst.msk [vmem:[#allocation2 + $0x10] sm:$0xff] %vm458_vm4, %v452_v40 }
 0x1f1   : > { %v435_v0 = vpop.xlane.xlu0 %434 }
 0x1f2   : > { %v568_v1 = vpop.xlane.xlu1 %567  ;;  %v450_v50 = vadd.f32 %v435_v0, %v426_v63 }
 0x1f4   : > { %459 = vst.msk [vmem:[#allocation2] sm:$0xff] %vm458_vm4, %v450_v50 }
 0x1f5   : > { %v441_v58 = vpop.xlane.xlu0 %440 }
 0x1f6   : > { %v437_v4 = vpop.xlane.xlu1 %436  ;;  %v453_v5 = vadd.f32 %v441_v58, %v429_v2 }
 0x1f7   : > { %v561_v6 = vld [vmem:[#allocation2 + $0x10] sm:$0xff]  ;;  %v451_v7 = vadd.f32 %v437_v4, %v427_v3 }
 0x1f8   : > { %v585_v8 = vadd.f32 %v572_v62, %v561_v6  ;;  %462 = vst.msk [vmem:[#allocation2 + $0x18] sm:$0xff] %vm458_vm4, %v453_v5 }
 0x1f9   : > { %460 = vst.msk [vmem:[#allocation2 + $0x8] sm:$0xff] %vm458_vm4, %v451_v7  ;;  %v574_v10 = vpop.xlane.xlu0 %573 }
 0x1fa   : > { %594 = vst.msk [vmem:[#allocation2 + $0x10] sm:$0xff] %vm591_vm5, %v585_v8  ;;  %v447_v11 = vpop.xlane.xlu1 %446 }
 0x1fb   : > { %v559_v12 = vld [vmem:[#allocation2] sm:$0xff]  ;;  %v456_v13 = vadd.f32 %v447_v11, %v432_v9 }
 0x1fc   : > { %v583_v14 = vadd.f32 %v568_v1, %v559_v12 }
 0x1fd   : > { %465 = vst.msk [vmem:[#allocation2 + $0x30] sm:$0xff] %vm458_vm4, %v456_v13  ;;  %v570_v15 = vpop.xlane.xlu0 %569 }
 0x1fe   : > { %592 = vst.msk [vmem:[#allocation2] sm:$0xff] %vm591_vm5, %v583_v14  ;;  %v580_v16 = vpop.xlane.xlu1 %579 }
 0x1ff   : > { %v562_v21 = vld [vmem:[#allocation2 + $0x18] sm:$0xff] }
 0x200   : > { %v586_v23 = vadd.f32 %v574_v10, %v562_v21  ;;  %v560_v24 = vld [vmem:[#allocation2 + $0x8] sm:$0xff] }
 0x201   : > { %v584_v26 = vadd.f32 %v570_v15, %v560_v24  ;;  %v449_v27 = vpop.xlane.xlu0 %448  ;;  %v694_v38 = vld [vmem:[#allocation2 + $0x10] sm:$0xff] }
 0x202   : > { %595 = vst.msk [vmem:[#allocation2 + $0x18] sm:$0xff] %vm591_vm5, %v586_v23  ;;  %v443_v28 = vpop.xlane.xlu1 %442  ;;  %v457_v29 = vadd.f32 %v449_v27, %v433_v22 }
 0x203   : > { %593 = vst.msk [vmem:[#allocation2 + $0x8] sm:$0xff] %vm591_vm5, %v584_v26  ;;  %v454_v30 = vadd.f32 %v443_v28, %v430_v25 }
 0x204   : > { %v565_v31 = vld [vmem:[#allocation2 + $0x30] sm:$0xff]  ;;  %466 = vst.msk [vmem:[#allocation2 + $0x38] sm:$0xff] %vm458_vm4, %v457_v29 }
 0x205   : > { %v589_v32 = vadd.f32 %v580_v16, %v565_v31  ;;  %463 = vst.msk [vmem:[#allocation2 + $0x20] sm:$0xff] %vm458_vm4, %v454_v30  ;;  %v582_v33 = vpop.xlane.xlu0 %581  ;;  %v692_v48 = vld [vmem:[#allocation2] sm:$0xff] }
 0x206   : > { %v576_v34 = vpop.xlane.xlu1 %575 }
 0x207   : > { %598 = vst.msk [vmem:[#allocation2 + $0x30] sm:$0xff] %vm591_vm5, %v589_v32 }
 0x209   : > { %v445_v37 = vpop.xlane.xlu0 %444  ;;  %v695_v51 = vld [vmem:[#allocation2 + $0x18] sm:$0xff] }
 0x20a   : > { %v705_v39 = vpop.xlane.xlu1 %704  ;;  %v455_v41 = vadd.f32 %v445_v37, %v431_v36  ;;  %v693_v19 = vld [vmem:[#allocation2 + $0x8] sm:$0xff] }
 0x20b   : > { %v566_v42 = vld [vmem:[#allocation2 + $0x38] sm:$0xff]  ;;  %v718_v43 = vadd.f32 %v705_v39, %v694_v38 }
 0x20c   : > { %v563_v44 = vld [vmem:[#allocation2 + $0x20] sm:$0xff]  ;;  %v590_v45 = vadd.f32 %v582_v33, %v566_v42  ;;  %464 = vst.msk [vmem:[#allocation2 + $0x28] sm:$0xff] %vm458_vm4, %v455_v41 }
 0x20d   : > { %v587_v17 = vadd.f32 %v576_v34, %v563_v44  ;;  %727 = vst.msk [vmem:[#allocation2 + $0x10] sm:$0xff] %vm724_vm6, %v718_v43  ;;  %v578_v46 = vpop.xlane.xlu0 %577 }
 0x20e   : > { %599 = vst.msk [vmem:[#allocation2 + $0x38] sm:$0xff] %vm591_vm5, %v590_v45  ;;  %v701_v47 = vpop.xlane.xlu1 %700  ;;  %v698_v57 = vld [vmem:[#allocation2 + $0x30] sm:$0xff] }
 0x20f   : > { %596 = vst.msk [vmem:[#allocation2 + $0x20] sm:$0xff] %vm591_vm5, %v587_v17  ;;  %v716_v49 = vadd.f32 %v701_v47, %v692_v48 }
 0x211   : > { %725 = vst.msk [vmem:[#allocation2] sm:$0xff] %vm724_vm6, %v716_v49  ;;  %v707_v52 = vpop.xlane.xlu0 %706 }
 0x212   : > { %v834_v18 = vpop.xlane.xlu1 %833  ;;  %v719_v53 = vadd.f32 %v707_v52, %v695_v51 }
 0x213   : > { %v564_v54 = vld [vmem:[#allocation2 + $0x28] sm:$0xff] }
 0x214   : > { %v588_v55 = vadd.f32 %v578_v46, %v564_v54  ;;  %728 = vst.msk [vmem:[#allocation2 + $0x18] sm:$0xff] %vm724_vm6, %v719_v53  ;;  %v827_v2 = vld [vmem:[#allocation2 + $0x10] sm:$0xff] }
 0x215   : > { %v703_v56 = vpop.xlane.xlu0 %702  ;;  %v699_v1 = vld [vmem:[#allocation2 + $0x38] sm:$0xff] }
 0x216   : > { %597 = vst.msk [vmem:[#allocation2 + $0x28] sm:$0xff] %vm591_vm5, %v588_v55  ;;  %v713_v59 = vpop.xlane.xlu1 %712  ;;  %v717_v60 = vadd.f32 %v703_v56, %v693_v19  ;;  %v696_v40 = vld [vmem:[#allocation2 + $0x20] sm:$0xff] }
 0x217   : > { %v722_v20 = vadd.f32 %v713_v59, %v698_v57 }
 0x218   : > { %v825_v61 = vld [vmem:[#allocation2] sm:$0xff]  ;;  %726 = vst.msk [vmem:[#allocation2 + $0x8] sm:$0xff] %vm724_vm6, %v717_v60 }
 0x219   : > { %v849_v35 = vadd.f32 %v834_v18, %v825_v61  ;;  %731 = vst.msk [vmem:[#allocation2 + $0x30] sm:$0xff] %vm724_vm6, %v722_v20  ;;  %v836_v62 = vpop.xlane.xlu0 %835 }
 0x21a   : > { %v709_v63 = vpop.xlane.xlu1 %708 }
 0x21b   : > { %858 = vst.msk [vmem:[#allocation2] sm:$0xff] %vm857_vm7, %v849_v35  ;;  %v720_v0 = vadd.f32 %v709_v63, %v696_v40  ;;  %v828_v13 = vld [vmem:[#allocation2 + $0x18] sm:$0xff] }
 0x21d   : > { %729 = vst.msk [vmem:[#allocation2 + $0x20] sm:$0xff] %vm724_vm6, %v720_v0  ;;  %v715_v50 = vpop.xlane.xlu0 %714  ;;  %v697_v7 = vld [vmem:[#allocation2 + $0x28] sm:$0xff] }
 0x21e   : > { %v838_v3 = vpop.xlane.xlu1 %837  ;;  %v723_v58 = vadd.f32 %v715_v50, %v699_v1 }
 0x21f   : > { %v826_v4 = vld [vmem:[#allocation2 + $0x8] sm:$0xff]  ;;  %v851_v5 = vadd.f32 %v838_v3, %v827_v2 }
 0x220   : > { %v850_v6 = vadd.f32 %v836_v62, %v826_v4  ;;  %732 = vst.msk [vmem:[#allocation2 + $0x38] sm:$0xff] %vm724_vm6, %v723_v58  ;;  %v831_v15 = vld [vmem:[#allocation2 + $0x30] sm:$0xff] }
 0x221   : > { %860 = vst.msk [vmem:[#allocation2 + $0x10] sm:$0xff] %vm857_vm7, %v851_v5  ;;  %v711_v8 = vpop.xlane.xlu0 %710 }
 0x222   : > { %859 = vst.msk [vmem:[#allocation2 + $0x8] sm:$0xff] %vm857_vm7, %v850_v6  ;;  %v842_v9 = vpop.xlane.xlu1 %841  ;;  %v721_v10 = vadd.f32 %v711_v8, %v697_v7  ;;  %v870_v29 = vld [vmem:[#allocation2] sm:$0xff] (!%p1041_p5) }
 0x223   : > { %879 = vst.msk [vmem:[#allocation9] sm:$0xff] (!%p1041_p5), %vm878_vm8, %v870_v29 }
 0x224   : > { %v829_v11 = vld [vmem:[#allocation2 + $0x20] sm:$0xff]  ;;  %730 = vst.msk [vmem:[#allocation2 + $0x28] sm:$0xff] %vm724_vm6, %v721_v10 }
 0x225   : > { %v853_v12 = vadd.f32 %v842_v9, %v829_v11  ;;  %v840_v14 = vpop.xlane.xlu0 %839 }
 0x226   : > { %v846_v16 = vpop.xlane.xlu1 %845  ;;  %v852_v21 = vadd.f32 %v840_v14, %v828_v13 }
 0x227   : > { %862 = vst.msk [vmem:[#allocation2 + $0x20] sm:$0xff] %vm857_vm7, %v853_v12  ;;  %v855_v22 = vadd.f32 %v846_v16, %v831_v15  ;;  %v832_v26 = vld [vmem:[#allocation2 + $0x38] sm:$0xff] }
 0x228   : > { %861 = vst.msk [vmem:[#allocation2 + $0x18] sm:$0xff] %vm857_vm7, %v852_v21  ;;  %v872_v31 = vld [vmem:[#allocation2 + $0x10] sm:$0xff] (!%p1041_p5) }
 0x229   : > { %864 = vst.msk [vmem:[#allocation2 + $0x30] sm:$0xff] %vm857_vm7, %v855_v22  ;;  %v844_v23 = vpop.xlane.xlu0 %843  ;;  %v871_v30 = vld [vmem:[#allocation2 + $0x8] sm:$0xff] (!%p1041_p5) }
 0x22a   : > { %869 = sbr.rel (%p1041_p5) target bundleno = 569 (0x239), region = 52  ;;  %880 = vst.msk [vmem:[#allocation9 + $0x8] sm:$0xff] (!%p1041_p5), %vm878_vm8, %v871_v30  ;;  %881 = vst.msk [vmem:[#allocation9 + $0x10] sm:$0xff] (!%p1041_p5), %vm878_vm8, %v872_v31 }
 0x22b   : > { %v830_v24 = vld [vmem:[#allocation2 + $0x28] sm:$0xff] }
 0x22c   : > { %v854_v25 = vadd.f32 %v844_v23, %v830_v24 }
 0x22d   : > { %v848_v27 = vpop.xlane.xlu0 %847 }
 0x22e   : > { %863 = vst.msk [vmem:[#allocation2 + $0x28] sm:$0xff] %vm857_vm7, %v854_v25  ;;  %v856_v28 = vadd.f32 %v848_v27, %v832_v26  ;;  %v874_v33 = vld [vmem:[#allocation2 + $0x20] sm:$0xff] (!%p1041_p5) }
 0x22f   : > { %v873_v32 = vld [vmem:[#allocation2 + $0x18] sm:$0xff] (!%p1041_p5)  ;;  %883 = vst.msk [vmem:[#allocation9 + $0x20] sm:$0xff] (!%p1041_p5), %vm878_vm8, %v874_v33 }
 0x230   : > { %865 = vst.msk [vmem:[#allocation2 + $0x38] sm:$0xff] %vm857_vm7, %v856_v28  ;;  %v876_v36 = vld [vmem:[#allocation2 + $0x30] sm:$0xff] (!%p1041_p5) }
 0x231   : > { %882 = vst.msk [vmem:[#allocation9 + $0x18] sm:$0xff] %vm878_vm8, %v873_v32  ;;  %885 = vst.msk [vmem:[#allocation9 + $0x30] sm:$0xff] %vm878_vm8, %v876_v36 }
 0x235   : > { %v875_v34 = vld [vmem:[#allocation2 + $0x28] sm:$0xff] }
 0x236   : > { %884 = vst.msk [vmem:[#allocation9 + $0x28] sm:$0xff] %vm878_vm8, %v875_v34 }
 0x237   : > { %v877_v37 = vld [vmem:[#allocation2 + $0x38] sm:$0xff] }
 0x238   : > { %886 = vst.msk [vmem:[#allocation9 + $0x38] sm:$0xff] %vm878_vm8, %v877_v37 }
 0x239 PF: > { %p1799_p6 = scmp.eq.s32.totalorder %s981_s18, 1  ;;  %s1438_s19 = smov [#allocation9]  }
 0x23a   : > { %s896_s20 = sshll.u32 %s1438_s19, 4  ;;  %s897_s20 = int_to_ptr.vmem [resolvable:$true] %s896_s20 }
 0x23b   : > { %s1341_s21 = scalar_lea.vmem %s897_s20, 1024  ;;  %p1348_p3 = scmp.lt.s32.totalorder %s897_s20, %s897_s20 }
 0x23c   : > { %p1342_p9 = scmp.ne.s32.totalorder %s897_s20, %s1341_s21  ;;  %p1349_p12 = scmp.lt.s32.totalorder %s1341_s21, %s1341_s21 }
 0x23e   : > { %p1343_p11 = pnand %p1342_p9, %p1799_p6  ;;  %p1350_p1 = por %p1349_p12, %p1348_p3 }
 0x240   : > { %p1344_p0 = pneg %p1343_p11 }
 0x242   : > { %p1351_p2 = pnand %p1350_p1, %p1344_p0 }
 0x244   : > { %1354 = shalt.err (!%p1351_p2)
}
 0x245   : > { %s1355_s18 = scalar_lea.hbm %s1846_s3, 1024 }
 0x246   : > { %p1356_p4 = scmp.ne.s32.totalorder %s1846_s3, %s1355_s18  ;;  %p1361_p7 = scmp.lt.u32.totalorder %s1355_s18, %s1846_s3 }
 0x248   : > { %p1357_p8 = pnand %p1356_p4, %p1799_p6 }
 0x24a   : > { %p1358_p13 = pneg %p1357_p8 }
 0x24c   : > { %p1363_p10 = pnand %p1361_p7, %p1358_p13 }
 0x24e   : > { %1366 = shalt.err (!%p1363_p10)
}
 0x24f   : > { %s1439_s23 = smov 128   ;;  %s1440_s10 = smov 8  }
 0x250   : > { %1167 = dma.vmem_to_hbm [thread:$0]  (%p1799_p6), %s897_s20, 1024, %s1846_s3, [#allocation5], %s1439_s23, %s1439_s23, %s1440_s10  }
 0x251   : > { %1400 = dma.done.wait (%p1799_p6), [#allocation5], 1024  }
 0x252   : > { %1402 = vsyncadd (%p1799_p6), [#allocation5], 4294966272 }
 0x253 PF: > { %s18_s17 = sadd.s32 1, %s1425_s17   ;;  %s1863_s12 = smov %s1409_s13 }
 0x254   : > { %p15_p5 = scmp.ge.s32.totalorder %s18_s17, 4   ;;  %s1864_s13 = smov %s1413_s14 }
 0x255   : > { %s1865_s14 = smov %s1624_s26  ;;  %s1866_s15 = smov %s1421_s16 }
 0x256   : > { %s1867_s16 = smov %s1869_s11  ;;  %17 = sbr.rel (!%p15_p5) target bundleno = 6 (0x6), region = 89 }
 0x25d   :  { %912 = vsyncpa [#allocation4], 1 }
 0x25e   :  { %914 = vsyncpa [#allocation4 + $0x1], 1 }
 0x25f   :  { %915 = vsyncpa [#allocation7], 1 }
 0x260   :  { %916 = vsyncpa [#allocation5], 1 }
 0x261   :  { %918 = vsyncpa [#allocation5 + $0x1], 1 }

</bundles_post_ra>
